<compile_context>
chip_gen: v5e
topology: v5e:2x2
jax: 0.10.0
libtpu: 0.0.40
codegen_flags: <defaults>
</compile_context>

<pallas_src>
import functools

import jax
import jax.numpy as jnp
from jax.experimental import pallas as pl
from jax.experimental.pallas import tpu as pltpu


def _round_up(x, m):
    return ((x + m - 1) // m) * m


def mlp_kernel(x_ref, w1_ref, b1_ref, w2_ref, b2_ref, w3_ref, b3_ref, o_ref):
    cdt = w1_ref.dtype  # compute (operand) dtype; accumulation is always f32
    # hidden1 + relu (MXU matmul, f32 accumulate; bias add / relu on VPU in f32)
    h = jnp.dot(x_ref[...].astype(cdt), w1_ref[...],
                preferred_element_type=jnp.float32)
    h = jnp.maximum(h + b1_ref[...], 0.0)
    # hidden2 + relu
    h = jnp.dot(h.astype(cdt), w2_ref[...], preferred_element_type=jnp.float32)
    h = jnp.maximum(h + b2_ref[...], 0.0)
    # predict (no activation)
    out = jnp.dot(h.astype(cdt), w3_ref[...], preferred_element_type=jnp.float32)
    o_ref[...] = (out + b3_ref[...]).astype(o_ref.dtype)


def prepare_params(w1, b1, w2, b2, w3, b3, compute_dtype=jnp.float32):
    """One-time parameter prep (call at init, NOT per forward).

    Weights are stored as (in, out) and cast to the compute dtype; biases are kept in
    f32 (they are added to the f32 accumulator) and reshaped to (1, out).
    """
    cast_w = lambda w: w.astype(compute_dtype)
    cast_b = lambda b: b.reshape(1, -1).astype(jnp.float32)
    return (cast_w(w1), cast_b(b1), cast_w(w2), cast_b(b2), cast_w(w3), cast_b(b3))


@functools.partial(jax.jit, static_argnames=("block_m", "min_pallas_batch"))
def mlp_forward(x, w1, b1, w2, b2, w3, b3, *, block_m=1024, min_pallas_batch=256):
    """out = relu(relu(x@W1+b1)@W2+b2)@W3+b3, weights stored as (in, out)."""
    B, n_input = x.shape
    n_output = w3.shape[1]
    compute_dtype = w1.dtype

    if B < min_pallas_batch:
        # Tiny batch: a fused XLA chain beats the pallas_call launch + slice overhead.
        h = jnp.maximum(
            jnp.dot(x.astype(compute_dtype), w1, preferred_element_type=jnp.float32) + b1,
            0.0)
        h = jnp.maximum(
            jnp.dot(h.astype(compute_dtype), w2, preferred_element_type=jnp.float32) + b2,
            0.0)
        return jnp.dot(h.astype(compute_dtype), w3,
                       preferred_element_type=jnp.float32) + b3

    # Batch tile: multiple of 16 for bf16 operands (min sublane tile), 8 for f32.
    sub = 16 if compute_dtype == jnp.bfloat16 else 8
    b_aligned = _round_up(B, sub)
    tm = min(block_m, b_aligned)
    if b_aligned >= 2 * sub:
        # Keep >=2 grid steps so the "parallel" batch axis can use both TCs on v7x.
        tm = min(tm, _round_up((b_aligned + 1) // 2, sub))
    tm = max(tm, sub)
    bp = _round_up(B, tm)
    grid_m = bp // tm

    xp = x if bp == B else jnp.pad(x, ((0, bp - B), (0, 0)))

    # Weights/biases: whole array per grid step (same block every step -> VMEM-resident).
    resident = lambda a: pl.BlockSpec(a.shape, lambda i: (0, 0))

    out = pl.pallas_call(
        mlp_kernel,
        out_shape=jax.ShapeDtypeStruct((bp, n_output), jnp.float32),
        grid=(grid_m,),
        in_specs=[
            pl.BlockSpec((tm, n_input), lambda i: (i, 0)),  # activations: batch-tiled
            resident(w1), resident(b1),
            resident(w2), resident(b2),
            resident(w3), resident(b3),
        ],
        out_specs=pl.BlockSpec((tm, n_output), lambda i: (i, 0)),
        compiler_params=pltpu.CompilerParams(
            dimension_semantics=("parallel",),  # shard batch across TCs on v7x
        ),
    )(xp, w1, b1, w2, b2, w3, b3)

    return out if bp == B else out[:B]


def init_linear(key, fan_in, fan_out):
    # PyTorch nn.Linear default init: U(-1/sqrt(fan_in), 1/sqrt(fan_in)).
    kw, kb = jax.random.split(key)
    bound = 1.0 / jnp.sqrt(fan_in)
    # Store weight as (in, out) so the kernel computes x @ W on the MXU directly.
    w = jax.random.uniform(kw, (fan_in, fan_out), jnp.float32, -bound, bound)
    b = jax.random.uniform(kb, (fan_out,), jnp.float32, -bound, bound)
    return w, b


def reference(x, w1, b1, w2, b2, w3, b3):
    h = jnp.maximum(x @ w1 + b1, 0.0)
    h = jnp.maximum(h @ w2 + b2, 0.0)
    return h @ w3 + b3


if __name__ == "__main__":
    # Small shapes implied by the module: batch=8, n_input=32, n_hidden=32, n_output=8.
    B, n_input, n_hidden, n_output = 8, 32, 32, 8

    key = jax.random.PRNGKey(0)
    kx, kx2, k1, k2, k3 = jax.random.split(key, 5)

    x = jax.random.normal(kx, (B, n_input), jnp.float32)
    w1, b1 = init_linear(k1, n_input, n_hidden)
    w2, b2 = init_linear(k2, n_hidden, n_hidden)
    w3, b3 = init_linear(k3, n_hidden, n_output)

    ref = reference(x, w1, b1, w2, b2, w3, b3)

    # One-time parameter prep (hoisted out of the forward path).
    params_f32 = prepare_params(w1, b1, w2, b2, w3, b3, compute_dtype=jnp.float32)

    # 1) f32 Pallas path at the module's small shapes (force the kernel).
    out = mlp_forward(x, *params_f32, min_pallas_batch=0)
    out = jax.block_until_ready(out)
    assert out.shape == (B, n_output)
    assert jnp.allclose(out, ref, atol=1e-4, rtol=1e-4)

    # 2) Default path at tiny batch: plain-XLA fallback (same semantics).
    out_fb = jax.block_until_ready(mlp_forward(x, *params_f32))
    assert jnp.allclose(out_fb, ref, atol=1e-4, rtol=1e-4)

    # 3) Larger (but still small) batch: multi-step grid + batch-padding path.
    B2 = 1000
    x2 = jax.random.normal(kx2, (B2, n_input), jnp.float32)
    ref2 = reference(x2, w1, b1, w2, b2, w3, b3)
    out2 = jax.block_until_ready(mlp_forward(x2, *params_f32))
    assert out2.shape == (B2, n_output)
    assert jnp.allclose(out2, ref2, atol=1e-4, rtol=1e-4)

    # 4) bf16-operand / f32-accumulate path (halves operand HBM traffic on v6e/v7x);
    #    looser tolerance because x and the weights are quantized to bf16.
    params_bf16 = prepare_params(w1, b1, w2, b2, w3, b3, compute_dtype=jnp.bfloat16)
    out_bf16 = jax.block_until_ready(mlp_forward(x, *params_bf16, min_pallas_batch=0))
    assert out_bf16.shape == (B, n_output)
    assert jnp.allclose(out_bf16, ref, atol=1e-1, rtol=1e-1)

    print("KERNEL_OK")
</pallas_src>

<mosaic_0001>
module attributes {stable_mosaic.version = 11 : i64} {
  func.func @mlp_kernel(%arg0: i32, %arg1: memref<8x32xf32, #tpu.memory_space<vmem>>, %arg2: memref<32x32xf32, #tpu.memory_space<vmem>>, %arg3: memref<1x32xf32, #tpu.memory_space<vmem>>, %arg4: memref<32x32xf32, #tpu.memory_space<vmem>>, %arg5: memref<1x32xf32, #tpu.memory_space<vmem>>, %arg6: memref<32x8xf32, #tpu.memory_space<vmem>>, %arg7: memref<1x8xf32, #tpu.memory_space<vmem>>, %arg8: memref<8x8xf32, #tpu.memory_space<vmem>>) attributes {dimension_semantics = [#tpu.dimension_semantics<parallel>], iteration_bounds = array<i64: 1>, scalar_prefetch = 0 : i64, scratch_operands = 0 : i64, tpu.core_type = #tpu.core_type<tc>, window_params = [{transform_indices = @transform_0, window_bounds = array<i64: 8, 32>}, {pipeline_mode = #tpu.pipeline_mode<synchronous>, transform_indices = @transform_1, window_bounds = array<i64: 32, 32>}, {pipeline_mode = #tpu.pipeline_mode<synchronous>, transform_indices = @transform_2, window_bounds = array<i64: 1, 32>}, {pipeline_mode = #tpu.pipeline_mode<synchronous>, transform_indices = @transform_3, window_bounds = array<i64: 32, 32>}, {pipeline_mode = #tpu.pipeline_mode<synchronous>, transform_indices = @transform_4, window_bounds = array<i64: 1, 32>}, {pipeline_mode = #tpu.pipeline_mode<synchronous>, transform_indices = @transform_5, window_bounds = array<i64: 32, 8>}, {pipeline_mode = #tpu.pipeline_mode<synchronous>, transform_indices = @transform_6, window_bounds = array<i64: 1, 8>}, {transform_indices = @transform_7, window_bounds = array<i64: 8, 8>}]} {
    %c0 = arith.constant 0 : index
    %c0_0 = arith.constant 0 : index
    %0 = vector.load %arg1[%c0, %c0_0] : memref<8x32xf32, #tpu.memory_space<vmem>>, vector<8x32xf32>
    %c0_1 = arith.constant 0 : index
    %c0_2 = arith.constant 0 : index
    %1 = vector.load %arg2[%c0_1, %c0_2] : memref<32x32xf32, #tpu.memory_space<vmem>>, vector<32x32xf32>
    %cst = arith.constant dense<0.000000e+00> : vector<8x32xf32>
    %2 = tpu.matmul %0, %1, %cst {dimension_numbers = #tpu.dot_dimension_numbers<[1], [0], [0], [1], [0, 0, 1, 1], [], []>} : vector<8x32xf32>, vector<32x32xf32>, vector<8x32xf32> -> vector<8x32xf32>
    %c0_3 = arith.constant 0 : index
    %c0_4 = arith.constant 0 : index
    %3 = vector.load %arg3[%c0_3, %c0_4] : memref<1x32xf32, #tpu.memory_space<vmem>>, vector<1x32xf32>
    %4 = vector.broadcast %3 : vector<1x32xf32> to vector<8x32xf32>
    %5 = arith.addf %2, %4 : vector<8x32xf32>
    %cst_5 = arith.constant 0.000000e+00 : f32
    %6 = vector.broadcast %cst_5 : f32 to vector<8x32xf32>
    %7 = arith.maximumf %5, %6 : vector<8x32xf32>
    %c0_6 = arith.constant 0 : index
    %c0_7 = arith.constant 0 : index
    %8 = vector.load %arg4[%c0_6, %c0_7] : memref<32x32xf32, #tpu.memory_space<vmem>>, vector<32x32xf32>
    %cst_8 = arith.constant dense<0.000000e+00> : vector<8x32xf32>
    %9 = tpu.matmul %7, %8, %cst_8 {dimension_numbers = #tpu.dot_dimension_numbers<[1], [0], [0], [1], [0, 0, 1, 1], [], []>} : vector<8x32xf32>, vector<32x32xf32>, vector<8x32xf32> -> vector<8x32xf32>
    %c0_9 = arith.constant 0 : index
    %c0_10 = arith.constant 0 : index
    %10 = vector.load %arg5[%c0_9, %c0_10] : memref<1x32xf32, #tpu.memory_space<vmem>>, vector<1x32xf32>
    %11 = vector.broadcast %10 : vector<1x32xf32> to vector<8x32xf32>
    %12 = arith.addf %9, %11 : vector<8x32xf32>
    %cst_11 = arith.constant 0.000000e+00 : f32
    %13 = vector.broadcast %cst_11 : f32 to vector<8x32xf32>
    %14 = arith.maximumf %12, %13 : vector<8x32xf32>
    %c0_12 = arith.constant 0 : index
    %c0_13 = arith.constant 0 : index
    %15 = vector.load %arg6[%c0_12, %c0_13] : memref<32x8xf32, #tpu.memory_space<vmem>>, vector<32x8xf32>
    %cst_14 = arith.constant dense<0.000000e+00> : vector<8x8xf32>
    %16 = tpu.matmul %14, %15, %cst_14 {dimension_numbers = #tpu.dot_dimension_numbers<[1], [0], [0], [1], [0, 0, 1, 1], [], []>} : vector<8x32xf32>, vector<32x8xf32>, vector<8x8xf32> -> vector<8x8xf32>
    %c0_15 = arith.constant 0 : index
    %c0_16 = arith.constant 0 : index
    %17 = vector.load %arg7[%c0_15, %c0_16] : memref<1x8xf32, #tpu.memory_space<vmem>>, vector<1x8xf32>
    %18 = vector.broadcast %17 : vector<1x8xf32> to vector<8x8xf32>
    %19 = arith.addf %16, %18 : vector<8x8xf32>
    %c0_17 = arith.constant 0 : index
    %c0_18 = arith.constant 0 : index
    %20 = vector.load %arg8[%c0_17, %c0_18] : memref<8x8xf32, #tpu.memory_space<vmem>>, vector<8x8xf32>
    tpu.vector_store %arg8[%c0_17, %c0_18], %19 {strides = array<i32>} : memref<8x8xf32, #tpu.memory_space<vmem>>, vector<8x8xf32>,
    return
  }
  func.func @transform_0(%arg0: i32) -> (i32, i32) {
    %c0_i32 = arith.constant 0 : i32
    %c0_i32_0 = arith.constant 0 : i32
    return %arg0, %c0_i32 : i32, i32
  }
  func.func @transform_1(%arg0: i32) -> (i32, i32) {
    %c0_i32 = arith.constant 0 : i32
    %c0_i32_0 = arith.constant 0 : i32
    %c0_i32_1 = arith.constant 0 : i32
    return %c0_i32, %c0_i32_0 : i32, i32
  }
  func.func @transform_2(%arg0: i32) -> (i32, i32) {
    %c0_i32 = arith.constant 0 : i32
    %c0_i32_0 = arith.constant 0 : i32
    %c0_i32_1 = arith.constant 0 : i32
    return %c0_i32, %c0_i32_0 : i32, i32
  }
  func.func @transform_3(%arg0: i32) -> (i32, i32) {
    %c0_i32 = arith.constant 0 : i32
    %c0_i32_0 = arith.constant 0 : i32
    %c0_i32_1 = arith.constant 0 : i32
    return %c0_i32, %c0_i32_0 : i32, i32
  }
  func.func @transform_4(%arg0: i32) -> (i32, i32) {
    %c0_i32 = arith.constant 0 : i32
    %c0_i32_0 = arith.constant 0 : i32
    %c0_i32_1 = arith.constant 0 : i32
    return %c0_i32, %c0_i32_0 : i32, i32
  }
  func.func @transform_5(%arg0: i32) -> (i32, i32) {
    %c0_i32 = arith.constant 0 : i32
    %c0_i32_0 = arith.constant 0 : i32
    %c0_i32_1 = arith.constant 0 : i32
    return %c0_i32, %c0_i32_0 : i32, i32
  }
  func.func @transform_6(%arg0: i32) -> (i32, i32) {
    %c0_i32 = arith.constant 0 : i32
    %c0_i32_0 = arith.constant 0 : i32
    %c0_i32_1 = arith.constant 0 : i32
    return %c0_i32, %c0_i32_0 : i32, i32
  }
  func.func @transform_7(%arg0: i32) -> (i32, i32) {
    %c0_i32 = arith.constant 0 : i32
    %c0_i32_0 = arith.constant 0 : i32
    return %arg0, %c0_i32 : i32, i32
  }
}

</mosaic_0001>

<bundles_post_ra>
// kernel: mlp_forward.1
= control target key start
LH: loop header
LB: loop body
LE: loop exit
PB: predicated region body
PF: predicated region fallthrough
CT: control target
= control target key end

     0   :  { %12 = vsyncpa [#allocation3], 0  ;;  %s310_s0 = inlined_call_operand.vmem [shape: f32[8,32], index: 0, kind: input, shape index: {}]   ;;  %s311_s1 = inlined_call_operand.vmem [shape: f32[32,32], index: 1, kind: input, shape index: {}]   ;;  %s312_s2 = inlined_call_operand.vmem [shape: f32[1,32], index: 2, kind: input, shape index: {}]   ;;  %s313_s3 = inlined_call_operand.hbm [shape: f32[32,32], index: 3, kind: input, shape index: {}]   ;;  %s314_s4 = inlined_call_operand.vmem [shape: f32[1,32], index: 4, kind: input, shape index: {}]   ;;  %s315_s5 = inlined_call_operand.vmem [shape: f32[32,8], index: 5, kind: input, shape index: {}]   ;;  %s316_s6 = inlined_call_operand.vmem [shape: f32[1,8], index: 6, kind: input, shape index: {}]   ;;  %s317_s7 = inlined_call_operand.hbm [shape: f32[8,8], index: 7, kind: output, shape index: {}]  }
   0x1   :  { %13 = vsyncpa [#allocation4], 0  ;;  %s24_s26 = sshll.u32 %s313_s3, 4  ;;  %s221_s27 = smov [#allocation2]   ;;  %s25_s26 = int_to_ptr.hbm [resolvable:$true] %s24_s26 }
   0x2   :  { %s26_s28 = sshll.u32 %s221_s27, 4  ;;  %s222_s29 = smov 128   ;;  %s27_s28 = int_to_ptr.vmem [resolvable:$true] %s26_s28 }
   0x3   :  { %s223_s30 = smov 8  }
   0x4   :  { %32 = dma.hbm_to_vmem [thread:$0]  %s25_s26, 512, %s27_s28, [#allocation3], %s222_s29, %s222_s29, %s223_s30  }
   0x5   :  { %217 = dma.done.wait [#allocation3], 512  }
   0x6   :  { %218 = vsyncadd [#allocation3], 4294966784  ;;  %v47_v0 = vld [vmem:[%s311_s1 + $0x18] sm:$0xff]  ;;  %v46_v1 = vld [vmem:[%s311_s1 + $0x10] sm:$0xff]  ;;  %vm52_vm0 = vcmask 261120   ;;  %s224_s28 = smov [#allocation5]  }
   0x7   :  { %68 = vmatpush.msra.mxu0 %v47_v0  ;;  %v80_v2 = vld [vmem:[#allocation2 + $0x18] sm:$0xff]  ;;  %v45_v3 = vld [vmem:[%s311_s1 + $0x8] sm:$0xff]  ;;  %v44_v4 = vld [vmem:[%s311_s1] sm:$0xff]  ;;  %s147_s29 = sshll.u32 %s224_s28, 4  ;;  %vm140_vm1 = vcmask 64512   ;;  %s148_s29 = int_to_ptr.vmem [resolvable:$true] %s147_s29 }
   0x8   :  { %100 = vmatpush.msra.mxu1 %v80_v2  ;;  %v43_v5 = vld [vmem:[%s310_s0] sm:$0xff]  ;;  %v79_v6 = vld [vmem:[#allocation2 + $0x10] sm:$0xff]  ;;  %v78_v7 = vld [vmem:[#allocation2 + $0x8] sm:$0xff] }
   0x9   :  { %69 = vmatpush.msra.mxu0 %v46_v1  ;;  %v77_v8 = vld [vmem:[#allocation2] sm:$0xff]  ;;  %v112_v9 = vld [vmem:[%s315_s5 + $0x18] sm:$0xff]  ;;  %v111_v14 = vld [vmem:[%s315_s5 + $0x10] sm:$0xff] }
   0xa   :  { %101 = vmatpush.msra.mxu1 %v79_v6  ;;  %132 = vmatpush.msra.mxu2 %v112_v9  ;;  %v166_v10 = vld [vmem:[%s312_s2] ss:$0 sm:$0xff]  ;;  %v110_v15 = vld [vmem:[%s315_s5 + $0x8] sm:$0xff] }
   0xb   :  { %70 = vmatpush.msra.mxu0 %v45_v3  ;;  %v109_v16 = vld [vmem:[%s315_s5] sm:$0xff]  ;;  %s149_s5 = sshll.u32 %s317_s7, 4  ;;  %s150_s5 = int_to_ptr.hbm [resolvable:$true] %s149_s5 }
   0xc   :  { %102 = vmatpush.msra.mxu1 %v78_v7  ;;  %133 = vmatpush.msra.mxu2 %v111_v14  ;;  %v167_v17 = vld [vmem:[%s314_s4] ss:$0 sm:$0xff] }
   0xd   :  { %71 = vmatpush.msra.mxu0 %v44_v4  ;;  %v168_v21 = vld [vmem:[%s316_s6] ss:$0 sm:$0xff] }
   0xe   :  { %159 = vmatmul.msk.f32.vlgmr.msra.gmra.mxu0 %vm52_vm0, %v43_v5  ;;  %103 = vmatpush.msra.mxu1 %v77_v8 }
   0xf   :  { %134 = vmatpush.msra.mxu2 %v110_v15 }
  0x11   :  { %135 = vmatpush.msra.mxu2 %v109_v16 }
  0x8b   :  { %v73_v11 = vpop.f32.mrf.mxu0 }
  0x8c   :  { %v74_v12 = vadd.f32 %v166_v10, %v73_v11 }
  0x8e   :  { %v76_v13 = vmax.f32 %v74_v12, 0.0 }
  0x90   :  { %160 = vmatmul.msk.f32.vlgmr.msra.gmra.mxu1 %vm52_vm0, %v76_v13 }
 0x10d   :  { %v105_v18 = vpop.f32.mrf.mxu1 }
 0x10e   :  { %v106_v19 = vadd.f32 %v167_v17, %v105_v18 }
 0x110   :  { %v108_v20 = vmax.f32 %v106_v19, 0.0 }
 0x112   :  { %161 = vmatmul.msk.f32.vlgmr.msra.gmra.mxu2 %vm52_vm0, %v108_v20 }
 0x195   :  { %v137_v22 = vpop.f32.mrf.mxu2 }
 0x196   :  { %v138_v23 = vadd.f32 %v168_v21, %v137_v22 }
 0x198   :  { %141 = vst.msk [vmem:[#allocation5] sm:$0xff] %vm140_vm1, %v138_v23 }
 0x199   :  { %152 = dma.vmem_to_hbm [thread:$0]  %s148_s29, 128, %s150_s5, [#allocation4]  }
 0x19a   :  { %219 = dma.done.wait [#allocation4], 128  }
 0x19b   :  { %220 = vsyncadd [#allocation4], 4294967168 }
 0x19c   :  { %157 = vsyncpa [#allocation3], 1 }
 0x19d   :  { %158 = vsyncpa [#allocation4], 1 }

</bundles_post_ra>
